<compile_context>
chip_gen: v7x
topology: tpu7x:2x2x1
jax: 0.10.0
libtpu: 0.0.40
codegen_flags: <defaults>
</compile_context>

<pallas_src>
import jax
import jax.numpy as jnp
from jax.experimental import pallas as pl
from jax.experimental.pallas import tpu as pltpu


def _round_up(v, m):
    return ((v + m - 1) // m) * m


def _choose_tile(n, tile_n, min_steps=4):
    """Batch tile: multiple of 128, <= tile_n, and small enough that the grid
    has >= min_steps steps (so v7x can shard the batch over both TCs)."""
    n = max(int(n), 1)
    tile = max(128, _round_up(min(int(tile_n), _round_up(n, 128)), 128))
    while tile > 128 and pl.cdiv(n, tile) < min_steps:
        tile = max(128, _round_up(tile // 2, 128))
    return tile


# ---------------------------------------------------------------------------
# Kernel: one batch tile of T rows, feature-major (features on sublanes,
# batch on lanes). Params arrive as a single packed (8, 128) f32 slab that
# stays VMEM-resident across the whole grid (constant index_map).
# ---------------------------------------------------------------------------
def mlp_kernel(x_ref, p_ref, o_ref):
    x = x_ref[...].astype(jnp.float32)   # (8, T)  batch-on-lanes, f32 accum
    p = p_ref[...]                       # (8, 128) packed params (f32)

    # Unpack (static slices of a VMEM-resident single-tile slab).
    w1 = p[0:6, 0:8]     # (6, 8)  (out, in)
    b1 = p[0:6, 8:9]     # (6, 1)
    w2 = p[0:4, 16:22]   # (4, 6)
    b2 = p[0:4, 22:23]   # (4, 1)
    w3 = p[0:1, 24:28]   # (1, 4)
    b3 = p[0:1, 28:29]   # (1, 1)

    def dense_relu(w, b, h):
        # h: (in, T), w: (out, in), b: (out, 1) -> relu(w @ h + b): (out, T)
        # K broadcast multiply-adds on the VPU (deliberately no MXU).
        # (out,1) weight columns lane-broadcast; (1,T) activation rows
        # sublane-broadcast; both stay inside one fused elementwise chain.
        acc = b + w[:, 0:1] * h[0:1, :]
        for k in range(1, h.shape[0]):
            acc = acc + w[:, k:k + 1] * h[k:k + 1, :]
        return jnp.maximum(acc, 0.0)

    h = dense_relu(w1, b1, x)    # (6, T)
    h = dense_relu(w2, b2, h)    # (4, T)
    h = dense_relu(w3, b3, h)    # (1, T)  -> lane-dense output tile
    o_ref[...] = h.astype(o_ref.dtype)


# ---------------------------------------------------------------------------
# Preferred entry point: feature-major activations, zero wrapper-side copies.
# ---------------------------------------------------------------------------
def mlp_forward_fm(x_fm, param_slab, *, tile_n=131072):
    """x_fm: (8, N) float32/bfloat16 feature-major activations.
    param_slab: (8, 128) f32 packed params. Returns (1, N) float32."""
    f, n = x_fm.shape
    assert f == 8, x_fm.shape

    tile = _choose_tile(n, tile_n)
    grid = (pl.cdiv(n, tile),)          # ragged last block handled by Pallas
    in_row_bytes = 8 * jnp.dtype(x_fm.dtype).itemsize

    return pl.pallas_call(
        mlp_kernel,
        out_shape=jax.ShapeDtypeStruct((1, n), jnp.float32),
        grid=grid,
        in_specs=[
            pl.BlockSpec((8, tile), lambda i: (0, i)),    # x tile (streamed)
            pl.BlockSpec((8, 128), lambda i: (0, 0)),     # params (resident)
        ],
        out_specs=pl.BlockSpec((1, tile), lambda i: (0, i)),  # lane-dense out
        compiler_params=pltpu.CompilerParams(
            dimension_semantics=("parallel",),
            vmem_limit_bytes=32 * 1024 * 1024,
        ),
        cost_estimate=pl.CostEstimate(
            flops=174 * n,
            transcendentals=0,
            bytes_accessed=(in_row_bytes + 4) * n + 8 * 128 * 4,
        ),
    )(x_fm, param_slab)


# ---------------------------------------------------------------------------
# Compatibility wrapper matching the PyTorch Model.forward signature (N, 8).
# The single transpose here is the only extra HBM pass; producers that can
# emit (8, N) directly should call mlp_forward_fm instead.
# ---------------------------------------------------------------------------
def mlp_forward(x, param_slab, *, tile_n=131072):
    n = x.shape[0]
    assert x.shape[1] == 8, x.shape
    out = mlp_forward_fm(x.T, param_slab, tile_n=tile_n)   # (1, N)
    return out.reshape(n, 1)                               # (N, 1)


# ---------------------------------------------------------------------------
# Parameter handling (PyTorch nn.Linear convention: weight is (out, in)).
# ---------------------------------------------------------------------------
def init_params(key):
    k1, k2, k3, k4, k5, k6 = jax.random.split(key, 6)

    def uniform(k, shape, fan_in):
        bound = 1.0 / jnp.sqrt(float(fan_in))
        return jax.random.uniform(k, shape, jnp.float32, -bound, bound)

    return {
        "w1": uniform(k1, (6, 8), 8), "b1": uniform(k2, (6,), 8),
        "w2": uniform(k3, (4, 6), 6), "b2": uniform(k4, (4,), 6),
        "w3": uniform(k5, (1, 4), 4), "b3": uniform(k6, (1,), 4),
    }


def pack_params(p):
    """Pack all six tensors into a single (8, 128) f32 slab."""
    slab = jnp.zeros((8, 128), jnp.float32)
    slab = slab.at[0:6, 0:8].set(p["w1"])
    slab = slab.at[0:6, 8].set(p["b1"])
    slab = slab.at[0:4, 16:22].set(p["w2"])
    slab = slab.at[0:4, 22].set(p["b2"])
    slab = slab.at[0:1, 24:28].set(p["w3"])
    slab = slab.at[0, 28].set(p["b3"][0])
    return slab


def reference_forward(x, p):
    h = jnp.maximum(x @ p["w1"].T + p["b1"], 0.0)
    h = jnp.maximum(h @ p["w2"].T + p["b2"], 0.0)
    h = jnp.maximum(h @ p["w3"].T + p["b3"], 0.0)
    return h


if __name__ == "__main__":
    key = jax.random.PRNGKey(0)
    kx, kp = jax.random.split(key)

    # N not a multiple of 128 -> exercises the ragged last block + a
    # multi-step grid (tile auto-selects to 256, grid=(4,)).
    N = 1000
    # Data produced directly in the preferred feature-major layout (8, N).
    x_fm = jax.random.normal(kx, (8, N), dtype=jnp.float32)
    params = init_params(kp)
    slab = pack_params(params)

    out_fm = jax.block_until_ready(mlp_forward_fm(x_fm, slab))   # (1, N)
    out_bm = jax.block_until_ready(mlp_forward(x_fm.T, slab))    # (N, 1)

    ref = reference_forward(x_fm.T, params)                      # (N, 1)
    assert out_fm.shape == (1, N), out_fm.shape
    assert out_bm.shape == (N, 1), out_bm.shape
    assert jnp.allclose(out_fm.T, ref, atol=1e-5, rtol=1e-5), "fm mismatch"
    assert jnp.allclose(out_bm, ref, atol=1e-5, rtol=1e-5), "bm mismatch"

    print("KERNEL_OK")
</pallas_src>

<mosaic_0001>
module attributes {stable_mosaic.version = 11 : i64} {
  func.func @mlp_kernel(%arg0: i32, %arg1: memref<8x256xf32, #tpu.memory_space<vmem>>, %arg2: memref<8x128xf32, #tpu.memory_space<vmem>>, %arg3: memref<1x256xf32, #tpu.memory_space<vmem>>) attributes {dimension_semantics = [#tpu.dimension_semantics<parallel>], iteration_bounds = array<i64: 4>, scalar_prefetch = 0 : i64, scratch_operands = 0 : i64, tpu.core_type = #tpu.core_type<tc>, window_params = [{transform_indices = @transform_0, window_bounds = array<i64: 8, 256>}, {pipeline_mode = #tpu.pipeline_mode<synchronous>, transform_indices = @transform_1, window_bounds = array<i64: 8, 128>}, {transform_indices = @transform_2, window_bounds = array<i64: 1, 256>}]} {
    %c0 = arith.constant 0 : index
    %c0_0 = arith.constant 0 : index
    %0 = vector.load %arg1[%c0, %c0_0] : memref<8x256xf32, #tpu.memory_space<vmem>>, vector<8x256xf32>
    %c0_1 = arith.constant 0 : index
    %c0_2 = arith.constant 0 : index
    %1 = vector.load %arg2[%c0_1, %c0_2] : memref<8x128xf32, #tpu.memory_space<vmem>>, vector<8x128xf32>
    %2 = vector.extract_strided_slice %1 {offsets = [0, 0], sizes = [6, 8], strides = [1, 1]} : vector<8x128xf32> to vector<6x8xf32>
    %3 = vector.extract_strided_slice %1 {offsets = [0, 8], sizes = [6, 1], strides = [1, 1]} : vector<8x128xf32> to vector<6x1xf32>
    %4 = vector.extract_strided_slice %1 {offsets = [0, 16], sizes = [4, 6], strides = [1, 1]} : vector<8x128xf32> to vector<4x6xf32>
    %5 = vector.extract_strided_slice %1 {offsets = [0, 22], sizes = [4, 1], strides = [1, 1]} : vector<8x128xf32> to vector<4x1xf32>
    %6 = vector.extract_strided_slice %1 {offsets = [0, 24], sizes = [1, 4], strides = [1, 1]} : vector<8x128xf32> to vector<1x4xf32>
    %7 = vector.extract_strided_slice %1 {offsets = [0, 28], sizes = [1, 1], strides = [1, 1]} : vector<8x128xf32> to vector<1x1xf32>
    %8 = vector.extract_strided_slice %2 {offsets = [0, 0], sizes = [6, 1], strides = [1, 1]} : vector<6x8xf32> to vector<6x1xf32>
    %9 = vector.extract_strided_slice %0 {offsets = [0, 0], sizes = [1, 256], strides = [1, 1]} : vector<8x256xf32> to vector<1x256xf32>
    %10 = vector.broadcast %8 : vector<6x1xf32> to vector<6x256xf32>
    %11 = vector.broadcast %9 : vector<1x256xf32> to vector<6x256xf32>
    %12 = arith.mulf %10, %11 : vector<6x256xf32>
    %13 = vector.broadcast %3 : vector<6x1xf32> to vector<6x256xf32>
    %14 = arith.addf %13, %12 : vector<6x256xf32>
    %15 = vector.extract_strided_slice %2 {offsets = [0, 1], sizes = [6, 1], strides = [1, 1]} : vector<6x8xf32> to vector<6x1xf32>
    %16 = vector.extract_strided_slice %0 {offsets = [1, 0], sizes = [1, 256], strides = [1, 1]} : vector<8x256xf32> to vector<1x256xf32>
    %17 = vector.broadcast %15 : vector<6x1xf32> to vector<6x256xf32>
    %18 = vector.broadcast %16 : vector<1x256xf32> to vector<6x256xf32>
    %19 = arith.mulf %17, %18 : vector<6x256xf32>
    %20 = arith.addf %14, %19 : vector<6x256xf32>
    %21 = vector.extract_strided_slice %2 {offsets = [0, 2], sizes = [6, 1], strides = [1, 1]} : vector<6x8xf32> to vector<6x1xf32>
    %22 = vector.extract_strided_slice %0 {offsets = [2, 0], sizes = [1, 256], strides = [1, 1]} : vector<8x256xf32> to vector<1x256xf32>
    %23 = vector.broadcast %21 : vector<6x1xf32> to vector<6x256xf32>
    %24 = vector.broadcast %22 : vector<1x256xf32> to vector<6x256xf32>
    %25 = arith.mulf %23, %24 : vector<6x256xf32>
    %26 = arith.addf %20, %25 : vector<6x256xf32>
    %27 = vector.extract_strided_slice %2 {offsets = [0, 3], sizes = [6, 1], strides = [1, 1]} : vector<6x8xf32> to vector<6x1xf32>
    %28 = vector.extract_strided_slice %0 {offsets = [3, 0], sizes = [1, 256], strides = [1, 1]} : vector<8x256xf32> to vector<1x256xf32>
    %29 = vector.broadcast %27 : vector<6x1xf32> to vector<6x256xf32>
    %30 = vector.broadcast %28 : vector<1x256xf32> to vector<6x256xf32>
    %31 = arith.mulf %29, %30 : vector<6x256xf32>
    %32 = arith.addf %26, %31 : vector<6x256xf32>
    %33 = vector.extract_strided_slice %2 {offsets = [0, 4], sizes = [6, 1], strides = [1, 1]} : vector<6x8xf32> to vector<6x1xf32>
    %34 = vector.extract_strided_slice %0 {offsets = [4, 0], sizes = [1, 256], strides = [1, 1]} : vector<8x256xf32> to vector<1x256xf32>
    %35 = vector.broadcast %33 : vector<6x1xf32> to vector<6x256xf32>
    %36 = vector.broadcast %34 : vector<1x256xf32> to vector<6x256xf32>
    %37 = arith.mulf %35, %36 : vector<6x256xf32>
    %38 = arith.addf %32, %37 : vector<6x256xf32>
    %39 = vector.extract_strided_slice %2 {offsets = [0, 5], sizes = [6, 1], strides = [1, 1]} : vector<6x8xf32> to vector<6x1xf32>
    %40 = vector.extract_strided_slice %0 {offsets = [5, 0], sizes = [1, 256], strides = [1, 1]} : vector<8x256xf32> to vector<1x256xf32>
    %41 = vector.broadcast %39 : vector<6x1xf32> to vector<6x256xf32>
    %42 = vector.broadcast %40 : vector<1x256xf32> to vector<6x256xf32>
    %43 = arith.mulf %41, %42 : vector<6x256xf32>
    %44 = arith.addf %38, %43 : vector<6x256xf32>
    %45 = vector.extract_strided_slice %2 {offsets = [0, 6], sizes = [6, 1], strides = [1, 1]} : vector<6x8xf32> to vector<6x1xf32>
    %46 = vector.extract_strided_slice %0 {offsets = [6, 0], sizes = [1, 256], strides = [1, 1]} : vector<8x256xf32> to vector<1x256xf32>
    %47 = vector.broadcast %45 : vector<6x1xf32> to vector<6x256xf32>
    %48 = vector.broadcast %46 : vector<1x256xf32> to vector<6x256xf32>
    %49 = arith.mulf %47, %48 : vector<6x256xf32>
    %50 = arith.addf %44, %49 : vector<6x256xf32>
    %51 = vector.extract_strided_slice %2 {offsets = [0, 7], sizes = [6, 1], strides = [1, 1]} : vector<6x8xf32> to vector<6x1xf32>
    %52 = vector.extract_strided_slice %0 {offsets = [7, 0], sizes = [1, 256], strides = [1, 1]} : vector<8x256xf32> to vector<1x256xf32>
    %53 = vector.broadcast %51 : vector<6x1xf32> to vector<6x256xf32>
    %54 = vector.broadcast %52 : vector<1x256xf32> to vector<6x256xf32>
    %55 = arith.mulf %53, %54 : vector<6x256xf32>
    %56 = arith.addf %50, %55 : vector<6x256xf32>
    %cst = arith.constant 0.000000e+00 : f32
    %57 = vector.broadcast %cst : f32 to vector<6x256xf32>
    %58 = arith.maximumf %56, %57 : vector<6x256xf32>
    %59 = vector.extract_strided_slice %4 {offsets = [0, 0], sizes = [4, 1], strides = [1, 1]} : vector<4x6xf32> to vector<4x1xf32>
    %60 = vector.extract_strided_slice %58 {offsets = [0, 0], sizes = [1, 256], strides = [1, 1]} : vector<6x256xf32> to vector<1x256xf32>
    %61 = vector.broadcast %59 : vector<4x1xf32> to vector<4x256xf32>
    %62 = vector.broadcast %60 : vector<1x256xf32> to vector<4x256xf32>
    %63 = arith.mulf %61, %62 : vector<4x256xf32>
    %64 = vector.broadcast %5 : vector<4x1xf32> to vector<4x256xf32>
    %65 = arith.addf %64, %63 : vector<4x256xf32>
    %66 = vector.extract_strided_slice %4 {offsets = [0, 1], sizes = [4, 1], strides = [1, 1]} : vector<4x6xf32> to vector<4x1xf32>
    %67 = vector.extract_strided_slice %58 {offsets = [1, 0], sizes = [1, 256], strides = [1, 1]} : vector<6x256xf32> to vector<1x256xf32>
    %68 = vector.broadcast %66 : vector<4x1xf32> to vector<4x256xf32>
    %69 = vector.broadcast %67 : vector<1x256xf32> to vector<4x256xf32>
    %70 = arith.mulf %68, %69 : vector<4x256xf32>
    %71 = arith.addf %65, %70 : vector<4x256xf32>
    %72 = vector.extract_strided_slice %4 {offsets = [0, 2], sizes = [4, 1], strides = [1, 1]} : vector<4x6xf32> to vector<4x1xf32>
    %73 = vector.extract_strided_slice %58 {offsets = [2, 0], sizes = [1, 256], strides = [1, 1]} : vector<6x256xf32> to vector<1x256xf32>
    %74 = vector.broadcast %72 : vector<4x1xf32> to vector<4x256xf32>
    %75 = vector.broadcast %73 : vector<1x256xf32> to vector<4x256xf32>
    %76 = arith.mulf %74, %75 : vector<4x256xf32>
    %77 = arith.addf %71, %76 : vector<4x256xf32>
    %78 = vector.extract_strided_slice %4 {offsets = [0, 3], sizes = [4, 1], strides = [1, 1]} : vector<4x6xf32> to vector<4x1xf32>
    %79 = vector.extract_strided_slice %58 {offsets = [3, 0], sizes = [1, 256], strides = [1, 1]} : vector<6x256xf32> to vector<1x256xf32>
    %80 = vector.broadcast %78 : vector<4x1xf32> to vector<4x256xf32>
    %81 = vector.broadcast %79 : vector<1x256xf32> to vector<4x256xf32>
    %82 = arith.mulf %80, %81 : vector<4x256xf32>
    %83 = arith.addf %77, %82 : vector<4x256xf32>
    %84 = vector.extract_strided_slice %4 {offsets = [0, 4], sizes = [4, 1], strides = [1, 1]} : vector<4x6xf32> to vector<4x1xf32>
    %85 = vector.extract_strided_slice %58 {offsets = [4, 0], sizes = [1, 256], strides = [1, 1]} : vector<6x256xf32> to vector<1x256xf32>
    %86 = vector.broadcast %84 : vector<4x1xf32> to vector<4x256xf32>
    %87 = vector.broadcast %85 : vector<1x256xf32> to vector<4x256xf32>
    %88 = arith.mulf %86, %87 : vector<4x256xf32>
    %89 = arith.addf %83, %88 : vector<4x256xf32>
    %90 = vector.extract_strided_slice %4 {offsets = [0, 5], sizes = [4, 1], strides = [1, 1]} : vector<4x6xf32> to vector<4x1xf32>
    %91 = vector.extract_strided_slice %58 {offsets = [5, 0], sizes = [1, 256], strides = [1, 1]} : vector<6x256xf32> to vector<1x256xf32>
    %92 = vector.broadcast %90 : vector<4x1xf32> to vector<4x256xf32>
    %93 = vector.broadcast %91 : vector<1x256xf32> to vector<4x256xf32>
    %94 = arith.mulf %92, %93 : vector<4x256xf32>
    %95 = arith.addf %89, %94 : vector<4x256xf32>
    %cst_3 = arith.constant 0.000000e+00 : f32
    %96 = vector.broadcast %cst_3 : f32 to vector<4x256xf32>
    %97 = arith.maximumf %95, %96 : vector<4x256xf32>
    %98 = vector.extract_strided_slice %6 {offsets = [0, 0], sizes = [1, 1], strides = [1, 1]} : vector<1x4xf32> to vector<1x1xf32>
    %99 = vector.extract_strided_slice %97 {offsets = [0, 0], sizes = [1, 256], strides = [1, 1]} : vector<4x256xf32> to vector<1x256xf32>
    %100 = vector.broadcast %98 : vector<1x1xf32> to vector<1x256xf32>
    %101 = arith.mulf %100, %99 : vector<1x256xf32>
    %102 = vector.broadcast %7 : vector<1x1xf32> to vector<1x256xf32>
    %103 = arith.addf %102, %101 : vector<1x256xf32>
    %104 = vector.extract_strided_slice %6 {offsets = [0, 1], sizes = [1, 1], strides = [1, 1]} : vector<1x4xf32> to vector<1x1xf32>
    %105 = vector.extract_strided_slice %97 {offsets = [1, 0], sizes = [1, 256], strides = [1, 1]} : vector<4x256xf32> to vector<1x256xf32>
    %106 = vector.broadcast %104 : vector<1x1xf32> to vector<1x256xf32>
    %107 = arith.mulf %106, %105 : vector<1x256xf32>
    %108 = arith.addf %103, %107 : vector<1x256xf32>
    %109 = vector.extract_strided_slice %6 {offsets = [0, 2], sizes = [1, 1], strides = [1, 1]} : vector<1x4xf32> to vector<1x1xf32>
    %110 = vector.extract_strided_slice %97 {offsets = [2, 0], sizes = [1, 256], strides = [1, 1]} : vector<4x256xf32> to vector<1x256xf32>
    %111 = vector.broadcast %109 : vector<1x1xf32> to vector<1x256xf32>
    %112 = arith.mulf %111, %110 : vector<1x256xf32>
    %113 = arith.addf %108, %112 : vector<1x256xf32>
    %114 = vector.extract_strided_slice %6 {offsets = [0, 3], sizes = [1, 1], strides = [1, 1]} : vector<1x4xf32> to vector<1x1xf32>
    %115 = vector.extract_strided_slice %97 {offsets = [3, 0], sizes = [1, 256], strides = [1, 1]} : vector<4x256xf32> to vector<1x256xf32>
    %116 = vector.broadcast %114 : vector<1x1xf32> to vector<1x256xf32>
    %117 = arith.mulf %116, %115 : vector<1x256xf32>
    %118 = arith.addf %113, %117 : vector<1x256xf32>
    %cst_4 = arith.constant 0.000000e+00 : f32
    %119 = vector.broadcast %cst_4 : f32 to vector<1x256xf32>
    %120 = arith.maximumf %118, %119 : vector<1x256xf32>
    %c0_5 = arith.constant 0 : index
    %c0_6 = arith.constant 0 : index
    %121 = vector.load %arg3[%c0_5, %c0_6] : memref<1x256xf32, #tpu.memory_space<vmem>>, vector<1x256xf32>
    tpu.vector_store %arg3[%c0_5, %c0_6], %120 {strides = array<i32>} : memref<1x256xf32, #tpu.memory_space<vmem>>, vector<1x256xf32>,
    return
  }
  func.func @transform_0(%arg0: i32) -> (i32, i32) {
    %c0_i32 = arith.constant 0 : i32
    %c0_i32_0 = arith.constant 0 : i32
    return %c0_i32, %arg0 : i32, i32
  }
  func.func @transform_1(%arg0: i32) -> (i32, i32) {
    %c0_i32 = arith.constant 0 : i32
    %c0_i32_0 = arith.constant 0 : i32
    %c0_i32_1 = arith.constant 0 : i32
    return %c0_i32, %c0_i32_0 : i32, i32
  }
  func.func @transform_2(%arg0: i32) -> (i32, i32) {
    %c0_i32 = arith.constant 0 : i32
    %c0_i32_0 = arith.constant 0 : i32
    return %c0_i32, %arg0 : i32, i32
  }
}

</mosaic_0001>

<bundles_post_ra>
// kernel: tpu_custom_call.1
= control target key start
LH: loop header
LB: loop body
LE: loop exit
PB: predicated region body
PF: predicated region fallthrough
CT: control target
= control target key end

     0   :  { %7 = vsyncpa [#allocation3], 0  ;;  %s1126_s0 = inlined_call_operand.hbm [shape: f32[8,1000], index: 0, kind: input, shape index: {}]   ;;  %s1127_s1 = inlined_call_operand.hbm [shape: f32[8,128], index: 1, kind: input, shape index: {}]   ;;  %s1128_s2 = inlined_call_operand.hbm [shape: f32[1,1000], index: 2, kind: output, shape index: {}]  }
   0x1   :  { %9 = vsyncpa [#allocation3 + $0x1], 0 }
   0x2   :  { %10 = vsyncpa [#allocation6], 0 }
   0x3   :  { %11 = vsyncpa [#allocation4], 0 }
   0x4   :  { %13 = vsyncpa [#allocation4 + $0x1], 0  ;;  %s873_s9 = smov 0   ;;  %s875_s10 = smov 0  }
   0x5   :  { %s877_s11 = smov 0   ;;  %s879_s12 = smov 0  }
   0x6 LB: > { %s894_s13 = sadd.s32 4294967295, %s831_s12   ;;  %s585_s14 = sadd.s32 4294967294, %s831_s12   ;;  %s831_s12 = sphi %s879_s12, %s1151_s12   ;;  %s827_s11 = sphi %s877_s11, %s1150_s11   ;;  %s823_s10 = sphi %s875_s10, %s1149_s10   ;;  %s819_s9 = sphi %s873_s9, %s1148_s9  }
   0x7   : > { %p39_p0 = scmp.ne.s32.totalorder %s823_s10, %s819_s9  ;;  %p1129_p1 = scmp.eq.s32.totalorder %s894_s13, 0 }
   0x8   : > { %p90_p3 = scmp.eq.s32.totalorder %s585_s14, 3  ;;  %p586_p5 = scmp.ge.s32.totalorder %s831_s12, 1 }
   0x9   : > { %p903_p4 = por %p1129_p1, %p39_p0  ;;  %p97_p7 = scmp.lt.s32.totalorder %s831_s12, 5 }
   0xa   : > { %p908_p6 = por %p90_p3, %p39_p0  ;;  %s833_s18 = smov [#allocation5]  }
   0xb   : > { %s1132_s15 = scalar_select %p903_p4, 1, 0 }
   0xc   : > { %s1133_s16 = scalar_select %p908_p6, 1, 0 }
   0xd   : > { %p913_p8 = pnand %p586_p5, %p97_p7  ;;  %s110_s19 = sshll.u32 %s833_s18, 4  ;;  %s111_s19 = int_to_ptr.vmem [resolvable:$true] %s110_s19 }
   0xe   : > { %s920_s20 = sadd.s32 1, %s831_s12   ;;  %s26_s24 = sadd.s32 1, %s827_s11 }
   0xf   : > { %s1134_s17 = scalar_select %p913_p8, 1, 0 }
  0x10   : > { %p611_p9 = pneg %p913_p8  ;;  %s23_s22 = ssub.s32 %s831_s12, %s920_s20 }
  0x11   : > { %p930_p11 = scmp.eq.s32.totalorder %s23_s22, 0  ;;  %s703_s27 = scalar_lea.hbm %s1127_s1, 128 }
  0x12   : > { %p924_p10 = pnand %p611_p9, %p1129_p1  ;;  %p704_p13 = scmp.ne.s32.totalorder %s1127_s1, %s703_s27 }
  0x13   : > { %s1136_s23 = scalar_select %p930_p11, 1, 0 }
  0x14   : > { %p705_p0 = pneg %p924_p10  ;;  %p710_p7 = scmp.lt.u32.totalorder %s703_s27, %s1127_s1 }
  0x16   : > { %p706_p3 = pnand %p705_p0, %p704_p13 }
  0x18   : > { %p707_p5 = pneg %p706_p3 }
  0x1a   : > { %p712_p9 = pnand %p710_p7, %p707_p5 }
  0x1c   : > { %715 = shalt.err (!%p712_p9)
}
  0x1d   : > { %s716_s4 = scalar_lea.vmem %s111_s19, 128  ;;  %p724_p6 = scmp.lt.s32.totalorder %s111_s19, %s111_s19 }
  0x1e   : > { %p717_p1 = scmp.ne.s32.totalorder %s111_s19, %s716_s4  ;;  %p725_p4 = scmp.lt.s32.totalorder %s716_s4, %s716_s4 }
  0x20   : > { %p719_p2 = pnand %p717_p1, %p705_p0  ;;  %p726_p8 = por %p725_p4, %p724_p6 }
  0x22   : > { %p720_p12 = pneg %p719_p2 }
  0x24   : > { %p727_p11 = pnand %p726_p8, %p720_p12 }
  0x26   : > { %730 = shalt.err (!%p727_p11)
}
  0x27   : > { %614 = dma.hbm_to_vmem [thread:$0]  (!%p924_p10), %s1127_s1, 128, %s111_s19, [#allocation6]  }
  0x28   : > { %p1137_p1 = scmp.ne.s32.totalorder %s1136_s23, 0  ;;  %p34_p2 = scmp.eq.s32.totalorder %s831_s12, 0 }
  0x29   : > { %p1138_p4 = scmp.ne.s32.totalorder %s827_s11, %s823_s10  ;;  %p1139_p6 = scmp.eq.s32.totalorder %s894_s13, 3 }
  0x2a   : > { %s956_s7 = scalar_select %p1137_p1, %s827_s11, %s26_s24  }
  0x2b   : > { %p964_p8 = por %p1139_p6, %p1138_p4  ;;  %p624_p11 = scmp.lt.s32.totalorder %s831_s12, 4 }
  0x2c   : > { %s121_s14 = sand.u32 1, %s827_s11   ;;  %p1141_p12 = pmov %p1138_p4 }
  0x2d   : > { %s589_s18 = sshll.u32 %s121_s14, 4  ;;  %s601_s21 = sshll.u32 %s831_s12, 8 }
  0x2e   : > { %p35_p13 = por %p34_p2, %p1141_p12  ;;  %s977_s19 = scalar_lea.hbm %s1126_s0, %s601_s21 }
  0x2f   : > { %s125_s23 = scalar_lea.vmem [#allocation2], %s589_s18  ;;  %s122_s27 = scalar_lea.sflag [#allocation3], %s121_s14 }
  0x30   : > { %s133_s24 = sshll.u32 %s125_s23, 4  ;;  %p979_p10 = pnand %p624_p11, %p35_p13  ;;  %s983_s24 = int_to_ptr.vmem [resolvable:$true] %s133_s24 }
  0x31   : > { %s731_s28 = scalar_lea.hbm %s977_s19, 256  ;;  %s736_s3 = scalar_lea.hbm %s1126_s0, 1024 }
  0x32   : > { %p732_p0 = scmp.ne.s32.totalorder %s977_s19, %s731_s28  ;;  %p733_p3 = pneg %p979_p10 }
  0x33   : > { %p737_p9 = scmp.lt.u32.totalorder %s977_s19, %s1126_s0  ;;  %p738_p1 = scmp.lt.u32.totalorder %s736_s3, %s731_s28 }
  0x34   : > { %p734_p5 = pnand %p733_p3, %p732_p0  ;;  %p740_p4 = scmp.lt.u32.totalorder %s731_s28, %s977_s19 }
  0x35   : > { %p739_p2 = por %p738_p1, %p737_p9 }
  0x36   : > { %p735_p7 = pneg %p734_p5 }
  0x37   : > { %p741_p6 = por %p740_p4, %p739_p2 }
  0x39   : > { %p742_p11 = pnand %p741_p6, %p735_p7 }
  0x3b   : > { %745 = shalt.err (!%p742_p11)
}
  0x3c   : > { %s746_s6 = scalar_lea.vmem %s983_s24, 256  ;;  %s834_s14 = smov [#allocation2]  }
  0x3d   : > { %p747_p12 = scmp.ne.s32.totalorder %s983_s24, %s746_s6  ;;  %s751_s18 = sshll.u32 %s834_s14, 4  ;;  %s752_s18 = int_to_ptr.vmem [resolvable:$false] %s751_s18 }
  0x3e   : > { %s753_s21 = scalar_lea.vmem %s752_s18, 512  ;;  %p754_p5 = scmp.lt.s32.totalorder %s983_s24, %s752_s18 }
  0x3f   : > { %p749_p13 = pnand %p747_p12, %p733_p3  ;;  %p755_p9 = scmp.lt.s32.totalorder %s753_s21, %s746_s6 }
  0x41   : > { %p750_p0 = pneg %p749_p13  ;;  %p756_p1 = por %p755_p9, %p754_p5 }
  0x43   : > { %p757_p2 = pnand %p756_p1, %p750_p0 }
  0x45   : > { %760 = shalt.err (!%p757_p2)
}
  0x46   : > { %618 = dma.hbm_to_vmem [thread:$0]  (!%p979_p10), %s977_s19, 256, %s983_s24, %s122_s27  }
  0x47   : > { %p1143_p7 = scmp.ne.s32.totalorder %s1134_s17, 0 }
  0x48   : > { %s1013_s22 = sand.u32 (!%p1143_p7), 1, %s823_s10   ;;  %p1144_p3 = scmp.ne.s32.totalorder (!%p1143_p7), %s1132_s15, 0 }
  0x49   : > { %142 = sbr.rel (%p1143_p7) target bundleno = 302 (0x12e), region = 28  ;;  %s593_s25 = sshll.u32 (!%p1143_p7), %s1013_s22, 4 }
  0x4a   : > { %s145_s23 = scalar_lea.sflag (!%p1143_p7), [#allocation3], %s1013_s22  ;;  %s1017_s28 = scalar_lea.vmem (!%p1143_p7), [#allocation2], %s593_s25 }
  0x50   : > { %806 = dma.done.wait (%p1144_p3), %s145_s23, 256  }
  0x51   : > { %808 = vsyncadd (%p1144_p3), %s145_s23, 4294967040  ;;  %p1145_p10 = scmp.eq.s32.totalorder %s894_s13, 0 }
  0x53   : > { %810 = dma.done.wait (%p1145_p10), [#allocation6], 128   ;;  %p1146_p4 = pmov %p1145_p10 }
  0x54   : > { %v835_v0 = vmov 1   ;;  %v836_v1 = vmov 0   ;;  %v177_v2 = vld [vmem:[#allocation5] sm:$0xff]  ;;  %v837_v3 = vmov 2   ;;  %v838_v4 = vmov 8   ;;  %v176_v26 = vld [vmem:[%s1017_s28 + $0x8] sm:$0xff] }
  0x55   : > { %812 = vsyncadd (%p1146_p4), [#allocation6], 4294967168  ;;  %684 = vset.pattern.permute.xlu1 %v835_v0  ;;  %682 = vset.pattern.permute.xlu0 %v836_v1  ;;  %v839_v5 = vmov 3   ;;  %v840_v6 = vmov 4   ;;  %v841_v7 = vmov 5   ;;  %v842_v8 = vmov 7  }
  0x56   : > { %200 = vperm.xlu1 %684, %v177_v2   ;;  %180 = vperm.xlu0 %682, %v177_v2   ;;  %v843_v9 = vmov 6   ;;  %v844_v10 = vmov 17   ;;  %v845_v11 = vmov 16   ;;  %v846_v12 = vmov 20   ;;  %v175_v25 = vld [vmem:[%s1017_s28] sm:$0xff]  ;;  %s595_s15 = sshll.u32 %s1013_s22, 1 }
  0x57   : > { %v847_v13 = vmov 22   ;;  %v848_v14 = vmov 28   ;;  %v849_v15 = vmov 18   ;;  %v850_v16 = vmov 27   ;;  %s602_s17 = sshll.u32 %s894_s13, 5  ;;  %s172_s19 = scalar_lea.vmem [#allocation7], %s595_s15 }
  0x58   : > { %v851_v17 = vmov 19   ;;  %v852_v18 = vmov 21   ;;  %v853_v19 = vmov 24   ;;  %v854_v20 = vmov 25   ;;  %s505_s24 = sshll.u32 %s172_s19, 4  ;;  %s1083_s29 = scalar_lea.hbm %s1128_s2, %s602_s17  ;;  %s1085_s24 = int_to_ptr.vmem [resolvable:$true] %s505_s24 }
  0x59   : > { %v855_v21 = vmov 26   ;;  %v183_v22 = vlaneseq  ;;  %s491_s30 = scalar_lea.sflag [#allocation4], %s1013_s22  ;;  %s761_s3 = scalar_lea.vmem %s1085_s24, 32 }
  0x5a   : > { %685 = vset.pattern.permute.xlu1 %v837_v3  ;;  %683 = vset.pattern.permute.xlu0 %v838_v4  ;;  %p762_p6 = scmp.ne.s32.totalorder %s1085_s24, %s761_s3  ;;  %s857_s13 = smov [#allocation7]  }
  0x5b   : > { %216 = vperm.xlu1 %685, %v177_v2   ;;  %194 = vperm.xlu0 %683, %v177_v2   ;;  %v1028_v23 = vshrl.u32 %v183_v22, 7  ;;  %vm487_vm0 = vcmp.lt.s32.totalorder %v183_v22, 256  ;;  %s765_s4 = sshll.u32 %s857_s13, 4  ;;  %s766_s4 = int_to_ptr.vmem [resolvable:$false] %s765_s4 }
  0x5c   : > { %p763_p11 = pnand %p762_p6, %p964_p8  ;;  %s767_s5 = scalar_lea.vmem %s766_s4, 64 }
  0x5d   : > { %v1031_v24 = vsub.s32 0, %v1028_v23  ;;  %v1036_v27 = vsub.s32 1, %v1028_v23  ;;  %v1041_v32 = vsub.s32 2, %v1028_v23  ;;  %v1046_v37 = vsub.s32 3, %v1028_v23  ;;  %p768_p13 = scmp.lt.s32.totalorder %s1085_s24, %s766_s4  ;;  %p769_p0 = scmp.lt.s32.totalorder %s767_s5, %s761_s3 }
  0x5e   : > { %v1051_v42 = vsub.s32 4, %v1028_v23  ;;  %v1056_v49 = vsub.s32 5, %v1028_v23  ;;  %v285_v0 = vsub.s32 6, %v1028_v23  ;;  %v301_v1 = vsub.s32 7, %v1028_v23  ;;  %p764_p12 = pneg %p763_p11 }
  0x5f   : > { %686 = vset.pattern.permute.xlu1 %v839_v5  ;;  %687 = vset.pattern.permute.xlu0 %v840_v6  ;;  %v186_v28 = vrot.slane %v175_v25, %v1031_v24  ;;  %v190_v29 = vrot.slane %v176_v26, %v1031_v24  ;;  %v206_v33 = vrot.slane %v175_v25, %v1036_v27  ;;  %p770_p5 = por %p769_p0, %p768_p13 }
  0x60   : > { %232 = vperm.xlu1 %686, %v177_v2   ;;  %248 = vperm.xlu0 %687, %v177_v2   ;;  %v210_v34 = vrot.slane %v176_v26, %v1036_v27  ;;  %v222_v38 = vrot.slane %v175_v25, %v1041_v32  ;;  %v226_v39 = vrot.slane %v176_v26, %v1041_v32 }
  0x61   : > { %v238_v47 = vrot.slane %v175_v25, %v1046_v37  ;;  %v242_v48 = vrot.slane %v176_v26, %v1046_v37  ;;  %v254_v54 = vrot.slane %v175_v25, %v1051_v42  ;;  %v258_v55 = vrot.slane %v176_v26, %v1051_v42  ;;  %p771_p9 = pnand %p770_p5, %p764_p12 }
  0x62   : > { %v270_v62 = vrot.slane %v175_v25, %v1056_v49  ;;  %v274_v63 = vrot.slane %v176_v26, %v1056_v49 }
  0x64   : > { %688 = vset.pattern.permute.xlu1 %v841_v7  ;;  %690 = vset.pattern.permute.xlu0 %v842_v8  ;;  %v286_v7 = vrot.slane %v175_v25, %v285_v0  ;;  %v290_v8 = vrot.slane %v176_v26, %v285_v0 }
  0x65   : > { %264 = vperm.xlu1 %688, %v177_v2   ;;  %296 = vperm.xlu0 %690, %v177_v2  }
  0x69   : > { %689 = vset.pattern.permute.xlu1 %v843_v9  ;;  %693 = vset.pattern.permute.xlu0 %v844_v10  ;;  %v302_v9 = vrot.slane %v175_v25, %v301_v1  ;;  %v306_v10 = vrot.slane %v176_v26, %v301_v1 }
  0x6a   : > { %280 = vperm.xlu1 %689, %v177_v2   ;;  %334 = vperm.xlu0 %693, %v177_v2  }
  0x6e   : > { %691 = vset.pattern.permute.xlu1 %v845_v11  ;;  %696 = vset.pattern.permute.xlu0 %v846_v12 }
  0x6f   : > { %314 = vperm.xlu1 %691, %v177_v2   ;;  %382 = vperm.xlu0 %696, %v177_v2  }
  0x73   : > { %692 = vset.pattern.permute.xlu1 %v847_v13  ;;  %699 = vset.pattern.permute.xlu0 %v848_v14 }
  0x74   : > { %328 = vperm.xlu1 %692, %v177_v2   ;;  %422 = vperm.xlu0 %699, %v177_v2  }
  0x78   : > { %694 = vset.pattern.permute.xlu1 %v849_v15  ;;  %702 = vset.pattern.permute.xlu0 %v850_v16 }
  0x79   : > { %350 = vperm.xlu1 %694, %v177_v2   ;;  %454 = vperm.xlu0 %702, %v177_v2  }
  0x7d   : > { %695 = vset.pattern.permute.xlu1 %v851_v17 }
  0x7e   : > { %366 = vperm.xlu1 %695, %v177_v2  }
  0x82   : > { %697 = vset.pattern.permute.xlu1 %v852_v18 }
  0x83   : > { %398 = vperm.xlu1 %697, %v177_v2  }
  0x87   : > { %698 = vset.pattern.permute.xlu1 %v853_v19 }
  0x88   : > { %416 = vperm.xlu1 %698, %v177_v2  }
  0x8c   : > { %700 = vset.pattern.permute.xlu1 %v854_v20 }
  0x8d   : > { %428 = vperm.xlu1 %700, %v177_v2  }
  0x91   : > { %701 = vset.pattern.permute.xlu1 %v855_v21 }
  0x92   : > { %442 = vperm.xlu1 %701, %v177_v2  }
  0xd5   : > { %v201_v30 = vpop.permute.xlu1 %200  ;;  %v181_v31 = vpop.permute.xlu0 %180 }
  0xd6   : > { %v191_v35 = vmul.f32 %v186_v28, %v181_v31  ;;  %v192_v36 = vmul.f32 %v190_v29, %v181_v31  ;;  %v211_v43 = vmul.f32 %v206_v33, %v201_v30  ;;  %v212_v44 = vmul.f32 %v210_v34, %v201_v30 }
  0xda   : > { %v217_v40 = vpop.permute.xlu1 %216  ;;  %v195_v41 = vpop.permute.xlu0 %194 }
  0xdb   : > { %v197_v45 = vadd.f32 %v195_v41, %v191_v35  ;;  %v198_v46 = vadd.f32 %v195_v41, %v192_v36  ;;  %v227_v50 = vmul.f32 %v222_v38, %v217_v40  ;;  %v228_v51 = vmul.f32 %v226_v39, %v217_v40 }
  0xdd   : > { %v213_v52 = vadd.f32 %v211_v43, %v197_v45  ;;  %v214_v53 = vadd.f32 %v212_v44, %v198_v46 }
  0xdf   : > { %v233_v56 = vpop.permute.xlu1 %232  ;;  %v229_v57 = vadd.f32 %v227_v50, %v213_v52  ;;  %v230_v58 = vadd.f32 %v228_v51, %v214_v53  ;;  %v249_v59 = vpop.permute.xlu0 %248 }
  0xe0   : > { %v243_v60 = vmul.f32 %v238_v47, %v233_v56  ;;  %v244_v61 = vmul.f32 %v242_v48, %v233_v56  ;;  %v259_v4 = vmul.f32 %v254_v54, %v249_v59  ;;  %v260_v5 = vmul.f32 %v258_v55, %v249_v59 }
  0xe2   : > { %v245_v2 = vadd.f32 %v243_v60, %v229_v57  ;;  %v246_v3 = vadd.f32 %v244_v61, %v230_v58 }
  0xe4   : > { %v265_v6 = vpop.permute.xlu1 %264  ;;  %v261_v11 = vadd.f32 %v259_v4, %v245_v2  ;;  %v262_v12 = vadd.f32 %v260_v5, %v246_v3  ;;  %v297_v15 = vpop.permute.xlu0 %296 }
  0xe5   : > { %v275_v13 = vmul.f32 %v270_v62, %v265_v6  ;;  %v276_v14 = vmul.f32 %v274_v63, %v265_v6  ;;  %v307_v17 = vmul.f32 %v302_v9, %v297_v15  ;;  %v308_v18 = vmul.f32 %v306_v10, %v297_v15 }
  0xe7   : > { %v277_v19 = vadd.f32 %v275_v13, %v261_v11  ;;  %v278_v20 = vadd.f32 %v276_v14, %v262_v12 }
  0xe9   : > { %v281_v16 = vpop.permute.xlu1 %280  ;;  %v335_v46 = vpop.permute.xlu0 %334 }
  0xea   : > { %v291_v21 = vmul.f32 %v286_v7, %v281_v16  ;;  %v292_v28 = vmul.f32 %v290_v8, %v281_v16 }
  0xec   : > { %v293_v29 = vadd.f32 %v291_v21, %v277_v19  ;;  %v294_v30 = vadd.f32 %v292_v28, %v278_v20 }
  0xee   : > { %v309_v31 = vadd.f32 %v307_v17, %v293_v29  ;;  %v310_v33 = vadd.f32 %v308_v18, %v294_v30  ;;  %v315_v34 = vpop.permute.xlu1 %314  ;;  %v383_v59 = vpop.permute.xlu0 %382  ;;  %v856_v29 = vmov 1966171168  }
  0xef   : > { %v471_v30 = vunpack.c.l.s4 %v856_v29 }
  0xf0   : > { %v311_v35 = vmax.f32 %v309_v31, 0.0  ;;  %v312_v25 = vmax.f32 %v310_v33, 0.0 }
  0xf2   : > { %v320_v26 = vrot.slane %v311_v35, %v1031_v24  ;;  %v324_v36 = vrot.slane %v312_v25, %v1031_v24  ;;  %v340_v41 = vrot.slane %v311_v35, %v1036_v27  ;;  %v344_v43 = vrot.slane %v312_v25, %v1036_v27 }
  0xf3   : > { %v329_v38 = vpop.permute.xlu1 %328  ;;  %v356_v51 = vrot.slane %v311_v35, %v1041_v32  ;;  %v360_v52 = vrot.slane %v312_v25, %v1041_v32  ;;  %v388_v56 = vrot.slane %v311_v35, %v1051_v42  ;;  %v392_v57 = vrot.slane %v312_v25, %v1051_v42  ;;  %v423_v14 = vpop.permute.xlu0 %422 }
  0xf4   : > { %v325_v39 = vmul.f32 %v320_v26, %v315_v34  ;;  %v326_v40 = vmul.f32 %v324_v36, %v315_v34  ;;  %v345_v47 = vmul.f32 %v340_v41, %v335_v46  ;;  %v346_v48 = vmul.f32 %v344_v43, %v335_v46 }
  0xf5   : > { %v372_v27 = vrot.slane %v311_v35, %v1046_v37  ;;  %v376_v58 = vrot.slane %v312_v25, %v1046_v37  ;;  %v393_v1 = vmul.f32 %v388_v56, %v383_v59  ;;  %v394_v32 = vmul.f32 %v392_v57, %v383_v59 }
  0xf6   : > { %v331_v44 = vadd.f32 %v329_v38, %v325_v39  ;;  %v332_v45 = vadd.f32 %v329_v38, %v326_v40  ;;  %v404_v4 = vrot.slane %v311_v35, %v1056_v49  ;;  %v408_v5 = vrot.slane %v312_v25, %v1056_v49 }
  0xf7   : > { %v472_v41 = vunpack.c.0.s8 %v471_v30 }
  0xf8   : > { %v351_v50 = vpop.permute.xlu1 %350  ;;  %v347_v53 = vadd.f32 %v345_v47, %v331_v44  ;;  %v348_v54 = vadd.f32 %v346_v48, %v332_v45  ;;  %v455_v25 = vpop.permute.xlu0 %454 }
  0xf9   : > { %v361_v24 = vmul.f32 %v356_v51, %v351_v50  ;;  %v362_v55 = vmul.f32 %v360_v52, %v351_v50  ;;  %v475_v50 = vsub.s32 %v472_v41, %v1028_v23 }
  0xfb   : > { %v363_v61 = vadd.f32 %v361_v24, %v347_v53  ;;  %v364_v62 = vadd.f32 %v362_v55, %v348_v54 }
  0xfd   : > { %v367_v60 = vpop.permute.xlu1 %366 }
  0xfe   : > { %v377_v63 = vmul.f32 %v372_v27, %v367_v60  ;;  %v378_v0 = vmul.f32 %v376_v58, %v367_v60 }
 0x100   : > { %v379_v2 = vadd.f32 %v377_v63, %v363_v61  ;;  %v380_v3 = vadd.f32 %v378_v0, %v364_v62 }
 0x102   : > { %v399_v6 = vpop.permute.xlu1 %398  ;;  %v395_v42 = vadd.f32 %v393_v1, %v379_v2  ;;  %v396_v7 = vadd.f32 %v394_v32, %v380_v3 }
 0x103   : > { %v409_v8 = vmul.f32 %v404_v4, %v399_v6  ;;  %v410_v9 = vmul.f32 %v408_v5, %v399_v6 }
 0x105   : > { %v411_v37 = vadd.f32 %v409_v8, %v395_v42  ;;  %v412_v10 = vadd.f32 %v410_v9, %v396_v7 }
 0x107   : > { %v417_v11 = vpop.permute.xlu1 %416  ;;  %v413_v12 = vmax.f32 %v411_v37, 0.0  ;;  %v414_v13 = vmax.f32 %v412_v10, 0.0 }
 0x109   : > { %v419_v15 = vmul.f32 %v417_v11, %v413_v12  ;;  %v420_v16 = vmul.f32 %v417_v11, %v414_v13  ;;  %v433_v18 = vrot.slane %v413_v12, 1  ;;  %v434_v19 = vrot.slane %v414_v13, 1 }
 0x10a   : > { %v457_v28 = vrot.slane %v413_v12, 3  ;;  %v458_v49 = vrot.slane %v414_v13, 3  ;;  %v445_v34 = vrot.slane %v413_v12, 2  ;;  %v446_v35 = vrot.slane %v414_v13, 2 }
 0x10b   : > { %v425_v31 = vadd.f32 %v423_v14, %v419_v15  ;;  %v426_v33 = vadd.f32 %v423_v14, %v420_v16 }
 0x10c   : > { %v429_v17 = vpop.permute.xlu1 %428  ;;  %v461_v43 = vmul.f32 %v457_v28, %v455_v25  ;;  %v462_v44 = vmul.f32 %v458_v49, %v455_v25 }
 0x10d   : > { %v437_v20 = vmul.f32 %v433_v18, %v429_v17  ;;  %v438_v21 = vmul.f32 %v434_v19, %v429_v17 }
 0x10f   : > { %v439_v36 = vadd.f32 %v437_v20, %v425_v31  ;;  %v440_v38 = vadd.f32 %v438_v21, %v426_v33 }
 0x111   : > { %v443_v26 = vpop.permute.xlu1 %442 }
 0x112   : > { %v449_v39 = vmul.f32 %v445_v34, %v443_v26  ;;  %v450_v40 = vmul.f32 %v446_v35, %v443_v26 }
 0x114   : > { %v451_v45 = vadd.f32 %v449_v39, %v439_v36  ;;  %v452_v46 = vadd.f32 %v450_v40, %v440_v38 }
 0x116   : > { %v463_v47 = vadd.f32 %v461_v43, %v451_v45  ;;  %v464_v48 = vadd.f32 %v462_v44, %v452_v46 }
 0x118   : > { %v465_v51 = vmax.f32 %v463_v47, 0.0  ;;  %v466_v52 = vmax.f32 %v464_v48, 0.0 }
 0x11a   : > { %v469_v53 = vcombine.low %v465_v51, %v466_v52 }
 0x11c   : > { %v476_v54 = vrot.slane %v469_v53, %v475_v50 }
 0x11e   : > { %v483_v24 = vrot.slane %v476_v54, %v475_v50 }
 0x120   : > { %489 = vst.msk [vmem:[%s172_s19] sm:$0x3] %vm487_vm0, %v483_v24 }
 0x121   : > { %774 = shalt.err (!%p771_p9)
}
 0x122   : > { %s775_s6 = scalar_lea.hbm %s1083_s29, 32  ;;  %s779_s21 = scalar_lea.hbm %s1128_s2, 128 }
 0x123   : > { %p776_p1 = scmp.ne.s32.totalorder %s1083_s29, %s775_s6  ;;  %p780_p3 = scmp.lt.u32.totalorder %s1083_s29, %s1128_s2 }
 0x124   : > { %p781_p10 = scmp.lt.u32.totalorder %s779_s21, %s775_s6  ;;  %p783_p6 = scmp.lt.u32.totalorder %s775_s6, %s1083_s29 }
 0x125   : > { %p777_p2 = pnand %p776_p1, %p964_p8 }
 0x126   : > { %p782_p4 = por %p781_p10, %p780_p3 }
 0x127   : > { %p778_p7 = pneg %p777_p2 }
 0x128   : > { %p784_p11 = por %p783_p6, %p782_p4 }
 0x12a   : > { %p785_p12 = pnand %p784_p11, %p778_p7 }
 0x12c   : > { %788 = shalt.err (!%p785_p12)
}
 0x12d   : > { %609 = dma.vmem_to_hbm [thread:$0]  (%p964_p8), %s1085_s24, 32, %s1083_s29, %s491_s30  }
 0x12e PF: > { %p626_p13 = scmp.ge.s32.totalorder %s831_s12, 2  ;;  %s517_s23 = sand.u32 1, %s819_s9  }
 0x12f   : > { %p1147_p0 = scmp.ne.s32.totalorder %s1133_s16, 0  ;;  %s518_s28 = scalar_lea.sflag [#allocation4], %s517_s23 }
 0x131   : > { %p620_p5 = pnand %p626_p13, %p1147_p0 }
 0x133   : > { %814 = dma.done.wait (!%p620_p5), %s518_s28, 32  }
 0x134   : > { %816 = vsyncadd (!%p620_p5), %s518_s28, 4294967264  ;;  %p16_p9 = scmp.ge.s32.totalorder %s920_s20, 6   ;;  %s1148_s9 = smov %s823_s10 }
 0x135   : > { %s1149_s10 = smov %s827_s11  ;;  %s1150_s11 = smov %s956_s7 }
 0x136   : > { %s1151_s12 = smov %s920_s20  ;;  %18 = sbr.rel (!%p16_p9) target bundleno = 6 (0x6), region = 77 }
 0x13d   :  { %523 = vsyncpa [#allocation3], 1 }
 0x13e   :  { %525 = vsyncpa [#allocation3 + $0x1], 1 }
 0x13f   :  { %526 = vsyncpa [#allocation6], 1 }
 0x140   :  { %527 = vsyncpa [#allocation4], 1 }
 0x141   :  { %529 = vsyncpa [#allocation4 + $0x1], 1 }

</bundles_post_ra>
